<compile_context>
chip_gen: v7x
topology: tpu7x:2x2x1
jax: 0.10.0
libtpu: 0.0.40
codegen_flags: <defaults>
</compile_context>

<pallas_src>
import functools

import jax
import jax.numpy as jnp
import numpy as np
from jax.experimental import pallas as pl
from jax.experimental.pallas import tpu as pltpu


def _round_up(x, m):
    return ((x + m - 1) // m) * m


def _build_kernel(n_linear, use_l2l):
    """Fused chain: (mean,var) -> [l2l] -> (Linear+ReLU)*n_hidden -> Linear.

    Ref order (inputs):
      mean, var, [l2l],
      if n_linear == 1:   wm, bm, wv, bv
      else:               w0m, w0v, b0, (w_i, b_i)*, wLm, wLv, bLm, bLv
    Ref order (outputs): out_mean, out_var
    Weights are bf16; biases f32; dots accumulate in f32.
    """
    n_hidden = n_linear - 1

    def kernel(*refs):
        it = iter(refs)
        mean_ref = next(it)
        var_ref = next(it)
        l2l_ref = next(it) if use_l2l else None

        m = mean_ref[...]
        v = var_ref[...]
        if use_l2l:
            l2l = l2l_ref[...].astype(jnp.bfloat16)
            m = jnp.dot(m.astype(jnp.bfloat16), l2l,
                        preferred_element_type=jnp.float32)
            v = jnp.dot(v.astype(jnp.bfloat16), l2l,
                        preferred_element_type=jnp.float32)

        if n_linear == 1:
            # No hidden layers: the output layer acts on the raw latents.
            wm_ref = next(it); bm_ref = next(it)
            wv_ref = next(it); bv_ref = next(it)
            out_m = jnp.dot(m.astype(jnp.bfloat16), wm_ref[...],
                            preferred_element_type=jnp.float32) + bm_ref[...]
            out_v = jnp.dot(v.astype(jnp.bfloat16), wv_ref[...],
                            preferred_element_type=jnp.float32) + bv_ref[...]
        else:
            # Layer 0: input-split form (no in-kernel concat needed).
            w0m_ref = next(it); w0v_ref = next(it); b0_ref = next(it)
            x = (jnp.dot(m.astype(jnp.bfloat16), w0m_ref[...],
                         preferred_element_type=jnp.float32)
                 + jnp.dot(v.astype(jnp.bfloat16), w0v_ref[...],
                           preferred_element_type=jnp.float32)
                 + b0_ref[...])
            x = jnp.maximum(x, 0.0)
            # Middle hidden layers: block-diagonal packed, lane-dense.
            for _ in range(n_hidden - 1):
                w_ref = next(it); b_ref = next(it)
                x = jnp.dot(x.astype(jnp.bfloat16), w_ref[...],
                            preferred_element_type=jnp.float32) + b_ref[...]
                x = jnp.maximum(x, 0.0)
            # Output layer: output-split form -> two exact-shape outputs.
            wLm_ref = next(it); wLv_ref = next(it)
            bLm_ref = next(it); bLv_ref = next(it)
            xb = x.astype(jnp.bfloat16)
            out_m = jnp.dot(xb, wLm_ref[...],
                            preferred_element_type=jnp.float32) + bLm_ref[...]
            out_v = jnp.dot(xb, wLv_ref[...],
                            preferred_element_type=jnp.float32) + bLv_ref[...]

        out_mean_ref = next(it)
        out_var_ref = next(it)
        out_mean_ref[...] = out_m.astype(out_mean_ref.dtype)
        out_var_ref[...] = out_v.astype(out_var_ref.dtype)

    return kernel


@functools.partial(jax.jit, static_argnames=("n_linear", "use_l2l"))
def _dynamics_forward(latent_mean, latent_var, latent2latent, flat_params,
                      *, n_linear, use_l2l):
    batch, dim_latent = latent_mean.shape

    args = [latent_mean, latent_var]
    if use_l2l:
        args.append(latent2latent)
    args.extend(flat_params)

    vmem = pl.BlockSpec(memory_space=pltpu.MemorySpace.VMEM)
    out_sds = jax.ShapeDtypeStruct((batch, dim_latent), jnp.float32)
    out_mean, out_var = pl.pallas_call(
        _build_kernel(n_linear, use_l2l),
        out_shape=(out_sds, out_sds),
        in_specs=[vmem] * len(args),
        out_specs=(vmem, vmem),
    )(*args)
    return out_mean, out_var


class DynamicsPallas:
    """JAX/Pallas equivalent of the PyTorch Dynamics module."""

    def __init__(self, dim_latent, layers, key):
        self.dim_latent = dim_latent
        self.layers = tuple(layers)
        n_hidden = len(self.layers)
        self.n_linear = n_hidden + 1

        def init_linear(key, fan_in, fan_out):
            # Deterministic torch-Linear-like uniform init; weights stored
            # pre-transposed as [in, out], bias as [1, out].  Weights are
            # rounded to bf16 once so the packed bf16 kernel weights and the
            # f32 reference weights are numerically identical values.
            kw, kb = jax.random.split(key)
            bound = 1.0 / np.sqrt(fan_in)
            w = jax.random.uniform(kw, (fan_in, fan_out), jnp.float32,
                                   minval=-bound, maxval=bound)
            b = jax.random.uniform(kb, (1, fan_out), jnp.float32,
                                   minval=-bound, maxval=bound)
            w = w.astype(jnp.bfloat16).astype(jnp.float32)
            return np.asarray(w), np.asarray(b)

        self.mean_params = []
        self.var_params = []
        curr = dim_latent
        for out_dim in self.layers:
            key, k1, k2 = jax.random.split(key, 3)
            self.mean_params.append(init_linear(k1, curr, out_dim))
            self.var_params.append(init_linear(k2, curr, out_dim))
            curr = out_dim
        key, k1, k2 = jax.random.split(key, 3)
        self.mean_params.append(init_linear(k1, curr, dim_latent))
        self.var_params.append(init_linear(k2, curr, dim_latent))

        # ---- one-time packing for the fused kernel (bf16 weights) ----
        d = dim_latent
        flat = []
        if self.n_linear == 1:
            (wm, bm), (wv, bv) = self.mean_params[0], self.var_params[0]
            flat += [jnp.asarray(wm, jnp.bfloat16), jnp.asarray(bm, jnp.float32),
                     jnp.asarray(wv, jnp.bfloat16), jnp.asarray(bv, jnp.float32)]
        else:
            # Layer 0: input-split halves (mean @ w0m + var @ w0v + b0),
            # output lanes padded to a multiple of 128 (lane-dense chain).
            out0 = self.layers[0]
            out_p0 = _round_up(2 * out0, 128)
            wm, bm = self.mean_params[0]
            wv, bv = self.var_params[0]
            w0m = np.zeros((d, out_p0), np.float32); w0m[:, :out0] = wm
            w0v = np.zeros((d, out_p0), np.float32); w0v[:, out0:2 * out0] = wv
            b0 = np.zeros((1, out_p0), np.float32)
            b0[0, :out0] = bm[0]; b0[0, out0:2 * out0] = bv[0]
            flat += [jnp.asarray(w0m, jnp.bfloat16),
                     jnp.asarray(w0v, jnp.bfloat16),
                     jnp.asarray(b0, jnp.float32)]
            # Middle hidden layers: block-diagonal packing, lane-dense pads.
            for i in range(1, n_hidden):
                in_d, out_d = self.layers[i - 1], self.layers[i]
                in_p = _round_up(2 * in_d, 128)
                out_p = _round_up(2 * out_d, 128)
                wm, bm = self.mean_params[i]
                wv, bv = self.var_params[i]
                w = np.zeros((in_p, out_p), np.float32)
                w[:in_d, :out_d] = wm
                w[in_d:2 * in_d, out_d:2 * out_d] = wv
                b = np.zeros((1, out_p), np.float32)
                b[0, :out_d] = bm[0]; b[0, out_d:2 * out_d] = bv[0]
                flat += [jnp.asarray(w, jnp.bfloat16),
                         jnp.asarray(b, jnp.float32)]
            # Output layer: output-split halves so the kernel emits the two
            # [batch, d] results directly (no post-call slicing).
            in_d = self.layers[-1]
            in_p = _round_up(2 * in_d, 128)
            wm, bm = self.mean_params[-1]
            wv, bv = self.var_params[-1]
            wLm = np.zeros((in_p, d), np.float32); wLm[:in_d, :] = wm
            wLv = np.zeros((in_p, d), np.float32); wLv[in_d:2 * in_d, :] = wv
            flat += [jnp.asarray(wLm, jnp.bfloat16),
                     jnp.asarray(wLv, jnp.bfloat16),
                     jnp.asarray(bm, jnp.float32),
                     jnp.asarray(bv, jnp.float32)]
        self.flat_params = tuple(flat)

    def __call__(self, latent_mean, latent_var, latent2latent=None):
        return _dynamics_forward(
            latent_mean, latent_var, latent2latent, self.flat_params,
            n_linear=self.n_linear, use_l2l=latent2latent is not None)

    # Pure-JAX reference on the ORIGINAL (unpacked, bf16-rounded) params.
    def reference(self, latent_mean, latent_var, latent2latent=None):
        m = latent_mean.astype(jnp.float32)
        v = latent_var.astype(jnp.float32)
        if latent2latent is not None:
            m = jnp.matmul(m, latent2latent)
            v = jnp.matmul(v, latent2latent)
        n_hidden = len(self.layers)
        for i, (w, b) in enumerate(self.mean_params):
            m = jnp.matmul(m, w) + b
            if i < n_hidden:
                m = jnp.maximum(m, 0.0)
        for i, (w, b) in enumerate(self.var_params):
            v = jnp.matmul(v, w) + b
            if i < n_hidden:
                v = jnp.maximum(v, 0.0)
        return m, v


if __name__ == "__main__":
    key = jax.random.PRNGKey(0)
    k_mod, k_mean, k_var, k_l2l = jax.random.split(key, 4)

    batch = 8
    dim_latent = 32
    layers = (64, 32)

    model = DynamicsPallas(dim_latent, layers, k_mod)

    latent_mean = jax.random.normal(k_mean, (batch, dim_latent), jnp.float32)
    latent_var = jax.random.normal(k_var, (batch, dim_latent), jnp.float32)
    latent2latent = jax.random.normal(k_l2l, (dim_latent, dim_latent),
                                      jnp.float32)

    # Path with latent2latent.
    next_mean, next_var = model(latent_mean, latent_var, latent2latent)
    jax.block_until_ready((next_mean, next_var))
    ref_mean, ref_var = model.reference(latent_mean, latent_var, latent2latent)
    np.testing.assert_allclose(np.asarray(next_mean), np.asarray(ref_mean),
                               rtol=3e-2, atol=3e-2)
    np.testing.assert_allclose(np.asarray(next_var), np.asarray(ref_var),
                               rtol=3e-2, atol=3e-2)

    # Path without latent2latent (matches the PyTorch default).
    nm2, nv2 = model(latent_mean, latent_var, None)
    jax.block_until_ready((nm2, nv2))
    rm2, rv2 = model.reference(latent_mean, latent_var, None)
    np.testing.assert_allclose(np.asarray(nm2), np.asarray(rm2),
                               rtol=3e-2, atol=3e-2)
    np.testing.assert_allclose(np.asarray(nv2), np.asarray(rv2),
                               rtol=3e-2, atol=3e-2)

    print("KERNEL_OK")
</pallas_src>

<mosaic_0001>
module attributes {stable_mosaic.version = 11 : i64} {
  func.func @kernel(%arg0: memref<8x32xf32, #tpu.memory_space<vmem>>, %arg1: memref<8x32xf32, #tpu.memory_space<vmem>>, %arg2: memref<32x32xf32, #tpu.memory_space<vmem>>, %arg3: memref<32x128xbf16, #tpu.memory_space<vmem>>, %arg4: memref<32x128xbf16, #tpu.memory_space<vmem>>, %arg5: memref<1x128xf32, #tpu.memory_space<vmem>>, %arg6: memref<128x128xbf16, #tpu.memory_space<vmem>>, %arg7: memref<1x128xf32, #tpu.memory_space<vmem>>, %arg8: memref<128x32xbf16, #tpu.memory_space<vmem>>, %arg9: memref<128x32xbf16, #tpu.memory_space<vmem>>, %arg10: memref<1x32xf32, #tpu.memory_space<vmem>>, %arg11: memref<1x32xf32, #tpu.memory_space<vmem>>, %arg12: memref<8x32xf32, #tpu.memory_space<vmem>>, %arg13: memref<8x32xf32, #tpu.memory_space<vmem>>) attributes {dimension_semantics = [], scalar_prefetch = 0 : i64, scratch_operands = 0 : i64, tpu.core_type = #tpu.core_type<tc>} {
    %c0 = arith.constant 0 : index
    %c0_0 = arith.constant 0 : index
    %0 = vector.load %arg0[%c0, %c0_0] : memref<8x32xf32, #tpu.memory_space<vmem>>, vector<8x32xf32>
    %c0_1 = arith.constant 0 : index
    %c0_2 = arith.constant 0 : index
    %1 = vector.load %arg1[%c0_1, %c0_2] : memref<8x32xf32, #tpu.memory_space<vmem>>, vector<8x32xf32>
    %c0_3 = arith.constant 0 : index
    %c0_4 = arith.constant 0 : index
    %2 = vector.load %arg2[%c0_3, %c0_4] : memref<32x32xf32, #tpu.memory_space<vmem>>, vector<32x32xf32>
    %3 = arith.truncf %2 : vector<32x32xf32> to vector<32x32xbf16>
    %4 = arith.truncf %0 : vector<8x32xf32> to vector<8x32xbf16>
    %cst = arith.constant dense<0.000000e+00> : vector<8x32xf32>
    %5 = tpu.matmul %4, %3, %cst {dimension_numbers = #tpu.dot_dimension_numbers<[1], [0], [0], [1], [0, 0, 1, 1], [], []>} : vector<8x32xbf16>, vector<32x32xbf16>, vector<8x32xf32> -> vector<8x32xf32>
    %6 = arith.truncf %1 : vector<8x32xf32> to vector<8x32xbf16>
    %cst_5 = arith.constant dense<0.000000e+00> : vector<8x32xf32>
    %7 = tpu.matmul %6, %3, %cst_5 {dimension_numbers = #tpu.dot_dimension_numbers<[1], [0], [0], [1], [0, 0, 1, 1], [], []>} : vector<8x32xbf16>, vector<32x32xbf16>, vector<8x32xf32> -> vector<8x32xf32>
    %8 = arith.truncf %5 : vector<8x32xf32> to vector<8x32xbf16>
    %c0_6 = arith.constant 0 : index
    %c0_7 = arith.constant 0 : index
    %9 = vector.load %arg3[%c0_6, %c0_7] : memref<32x128xbf16, #tpu.memory_space<vmem>>, vector<32x128xbf16>
    %cst_8 = arith.constant dense<0.000000e+00> : vector<8x128xf32>
    %10 = tpu.matmul %8, %9, %cst_8 {dimension_numbers = #tpu.dot_dimension_numbers<[1], [0], [0], [1], [0, 0, 1, 1], [], []>} : vector<8x32xbf16>, vector<32x128xbf16>, vector<8x128xf32> -> vector<8x128xf32>
    %11 = arith.truncf %7 : vector<8x32xf32> to vector<8x32xbf16>
    %c0_9 = arith.constant 0 : index
    %c0_10 = arith.constant 0 : index
    %12 = vector.load %arg4[%c0_9, %c0_10] : memref<32x128xbf16, #tpu.memory_space<vmem>>, vector<32x128xbf16>
    %cst_11 = arith.constant dense<0.000000e+00> : vector<8x128xf32>
    %13 = tpu.matmul %11, %12, %cst_11 {dimension_numbers = #tpu.dot_dimension_numbers<[1], [0], [0], [1], [0, 0, 1, 1], [], []>} : vector<8x32xbf16>, vector<32x128xbf16>, vector<8x128xf32> -> vector<8x128xf32>
    %14 = arith.addf %10, %13 : vector<8x128xf32>
    %c0_12 = arith.constant 0 : index
    %c0_13 = arith.constant 0 : index
    %15 = vector.load %arg5[%c0_12, %c0_13] : memref<1x128xf32, #tpu.memory_space<vmem>>, vector<1x128xf32>
    %16 = vector.broadcast %15 : vector<1x128xf32> to vector<8x128xf32>
    %17 = arith.addf %14, %16 : vector<8x128xf32>
    %cst_14 = arith.constant 0.000000e+00 : f32
    %18 = vector.broadcast %cst_14 : f32 to vector<8x128xf32>
    %19 = arith.maximumf %17, %18 : vector<8x128xf32>
    %20 = arith.truncf %19 : vector<8x128xf32> to vector<8x128xbf16>
    %c0_15 = arith.constant 0 : index
    %c0_16 = arith.constant 0 : index
    %21 = vector.load %arg6[%c0_15, %c0_16] : memref<128x128xbf16, #tpu.memory_space<vmem>>, vector<128x128xbf16>
    %cst_17 = arith.constant dense<0.000000e+00> : vector<8x128xf32>
    %22 = tpu.matmul %20, %21, %cst_17 {dimension_numbers = #tpu.dot_dimension_numbers<[1], [0], [0], [1], [0, 0, 1, 1], [], []>} : vector<8x128xbf16>, vector<128x128xbf16>, vector<8x128xf32> -> vector<8x128xf32>
    %c0_18 = arith.constant 0 : index
    %c0_19 = arith.constant 0 : index
    %23 = vector.load %arg7[%c0_18, %c0_19] : memref<1x128xf32, #tpu.memory_space<vmem>>, vector<1x128xf32>
    %24 = vector.broadcast %23 : vector<1x128xf32> to vector<8x128xf32>
    %25 = arith.addf %22, %24 : vector<8x128xf32>
    %cst_20 = arith.constant 0.000000e+00 : f32
    %26 = vector.broadcast %cst_20 : f32 to vector<8x128xf32>
    %27 = arith.maximumf %25, %26 : vector<8x128xf32>
    %28 = arith.truncf %27 : vector<8x128xf32> to vector<8x128xbf16>
    %c0_21 = arith.constant 0 : index
    %c0_22 = arith.constant 0 : index
    %29 = vector.load %arg8[%c0_21, %c0_22] : memref<128x32xbf16, #tpu.memory_space<vmem>>, vector<128x32xbf16>
    %cst_23 = arith.constant dense<0.000000e+00> : vector<8x32xf32>
    %30 = tpu.matmul %28, %29, %cst_23 {dimension_numbers = #tpu.dot_dimension_numbers<[1], [0], [0], [1], [0, 0, 1, 1], [], []>} : vector<8x128xbf16>, vector<128x32xbf16>, vector<8x32xf32> -> vector<8x32xf32>
    %c0_24 = arith.constant 0 : index
    %c0_25 = arith.constant 0 : index
    %31 = vector.load %arg10[%c0_24, %c0_25] : memref<1x32xf32, #tpu.memory_space<vmem>>, vector<1x32xf32>
    %32 = vector.broadcast %31 : vector<1x32xf32> to vector<8x32xf32>
    %33 = arith.addf %30, %32 : vector<8x32xf32>
    %c0_26 = arith.constant 0 : index
    %c0_27 = arith.constant 0 : index
    %34 = vector.load %arg9[%c0_26, %c0_27] : memref<128x32xbf16, #tpu.memory_space<vmem>>, vector<128x32xbf16>
    %cst_28 = arith.constant dense<0.000000e+00> : vector<8x32xf32>
    %35 = tpu.matmul %28, %34, %cst_28 {dimension_numbers = #tpu.dot_dimension_numbers<[1], [0], [0], [1], [0, 0, 1, 1], [], []>} : vector<8x128xbf16>, vector<128x32xbf16>, vector<8x32xf32> -> vector<8x32xf32>
    %c0_29 = arith.constant 0 : index
    %c0_30 = arith.constant 0 : index
    %36 = vector.load %arg11[%c0_29, %c0_30] : memref<1x32xf32, #tpu.memory_space<vmem>>, vector<1x32xf32>
    %37 = vector.broadcast %36 : vector<1x32xf32> to vector<8x32xf32>
    %38 = arith.addf %35, %37 : vector<8x32xf32>
    %c0_31 = arith.constant 0 : index
    %c0_32 = arith.constant 0 : index
    %39 = vector.load %arg12[%c0_31, %c0_32] : memref<8x32xf32, #tpu.memory_space<vmem>>, vector<8x32xf32>
    tpu.vector_store %arg12[%c0_31, %c0_32], %33 {strides = array<i32>} : memref<8x32xf32, #tpu.memory_space<vmem>>, vector<8x32xf32>,
    %c0_33 = arith.constant 0 : index
    %c0_34 = arith.constant 0 : index
    %40 = vector.load %arg13[%c0_33, %c0_34] : memref<8x32xf32, #tpu.memory_space<vmem>>, vector<8x32xf32>
    tpu.vector_store %arg13[%c0_33, %c0_34], %38 {strides = array<i32>} : memref<8x32xf32, #tpu.memory_space<vmem>>, vector<8x32xf32>,
    return
  }
}

</mosaic_0001>

<bundles_post_ra>
// kernel: _dynamics_forward.1
= control target key start
LH: loop header
LB: loop body
LE: loop exit
PB: predicated region body
PF: predicated region fallthrough
CT: control target
= control target key end

     0   :  { %19 = vsyncpa [#allocation3], 0  ;;  %v885_v3 = vmov 0.0   ;;  %vm886_vm0 = vmmov 0   ;;  %vm55_vm1 = vcmask 261120   ;;  %s1156_s0 = inlined_call_operand.vmem [shape: f32[8,32], index: 0, kind: input, shape index: {}]   ;;  %s1157_s1 = inlined_call_operand.vmem [shape: f32[8,32], index: 1, kind: input, shape index: {}]   ;;  %s1158_s2 = inlined_call_operand.vmem [shape: f32[32,32], index: 2, kind: input, shape index: {}]   ;;  %s1159_s3 = inlined_call_operand.vmem [shape: bf16[32,128], index: 3, kind: input, shape index: {}]   ;;  %s1160_s4 = inlined_call_operand.vmem [shape: bf16[32,128], index: 4, kind: input, shape index: {}]   ;;  %s1161_s5 = inlined_call_operand.vmem [shape: f32[1,128], index: 5, kind: input, shape index: {}]   ;;  %s1162_s6 = inlined_call_operand.vmem [shape: bf16[128,128], index: 6, kind: input, shape index: {}]   ;;  %s1163_s7 = inlined_call_operand.vmem [shape: f32[1,128], index: 7, kind: input, shape index: {}]   ;;  %s1164_s8 = inlined_call_operand.vmem [shape: bf16[128,32], index: 8, kind: input, shape index: {}]   ;;  %s1165_s9 = inlined_call_operand.vmem [shape: bf16[128,32], index: 9, kind: input, shape index: {}]   ;;  %s1166_s10 = inlined_call_operand.vmem [shape: f32[1,32], index: 10, kind: input, shape index: {}]   ;;  %s1167_s11 = inlined_call_operand.vmem [shape: f32[1,32], index: 11, kind: input, shape index: {}]   ;;  %s1168_s12 = inlined_call_operand.hbm [shape: f32[8,32], index: 12, kind: output, shape index: {0}]   ;;  %s1169_s13 = inlined_call_operand.hbm [shape: f32[8,32], index: 13, kind: output, shape index: {1}]  }
   0x1   :  { %v48_v0 = vld [vmem:[%s1158_s2] sm:$0xff]  ;;  %v49_v1 = vld [vmem:[%s1158_s2 + $0x8] sm:$0xff]  ;;  %v50_v2 = vld [vmem:[%s1158_s2 + $0x10] sm:$0xff]  ;;  %713 = vmatprep.subr.bf16.mxu1 %v885_v3  ;;  %717 = vmatprep.mubr.msk.bf16.mxu1 %vm886_vm0, %v885_v3 }
   0x2   :  { %v52_v4 = vpack.c.bf16 %v49_v1, %v48_v0  ;;  %v51_v5 = vld [vmem:[%s1158_s2 + $0x18] sm:$0xff]  ;;  %v46_v6 = vld [vmem:[%s1156_s0] sm:$0xff]  ;;  %745 = vmatprep.subr.bf16.mxu0 %v885_v3  ;;  %761 = vmatprep.mubr.msk.bf16.mxu0 %vm886_vm0, %v885_v3 }
   0x3   :  { %v53_v7 = vpack.c.bf16 %v51_v5, %v50_v2  ;;  %v54_v8 = vpack.c.bf16 %v46_v6, %v46_v6  ;;  %v47_v9 = vld [vmem:[%s1157_s1] sm:$0xff] }
   0x4   :  { %714 = vmatpush3.bf16.msra.mxu1 %v52_v4  ;;  %v99_v10 = vpack.c.bf16 %v47_v9, %v47_v9 }
   0x5   :  { %715 = vmatprep.subr.bf16.mxu1 %v885_v3 }
   0x8   :  { %716 = vmatpush3.bf16.msra.mxu1 %v53_v7 }
   0x9   :  { %721 = vmatprep.subr.bf16.mxu1 %v885_v3 }
   0xb   :  { %718 = vmatmul.mubr.msk.bf16.vlgmr.msra.gmra.mrb[0].mxu1 %vm55_vm1, %v54_v8 }
   0xc   :  { %722 = vmatpush3.bf16.msra.mxu1 %v52_v4  ;;  %725 = vmatprep.mubr.msk.bf16.mxu1 %vm886_vm0, %v885_v3 }
   0xd   :  { %723 = vmatprep.subr.bf16.mxu1 %v885_v3 }
  0x10   :  { %724 = vmatpush3.bf16.msra.mxu1 %v53_v7 }
  0x11   :  { %729 = vmatprep.subr.bf16.mxu1 %v885_v3 }
  0x13   :  { %726 = vmatmul.mubr.msk.bf16.vlgmr.msra.gmra.mrb[4].mxu1 %vm55_vm1, %v99_v10 }
  0x14   :  { %733 = vmatprep.mubr.msk.bf16.mxu1 %vm886_vm0, %v885_v3 }
  0x15   :  { %20 = vsyncpa [#allocation5], 0  ;;  %v809_v11 = vld [vmem:[%s1160_s4] sm:$0xff]   ;;  %v810_v12 = vld [vmem:[%s1160_s4 + $0x8] sm:$0xff]   ;;  %s887_s14 = smov [#allocation2]  }
  0x16   :  { %730 = vmatpush3.bf16.msra.mxu1 %v809_v11  ;;  %v813_v13 = vld [vmem:[%s1162_s6] sm:$0xff]   ;;  %v814_v14 = vld [vmem:[%s1162_s6 + $0x8] sm:$0xff]   ;;  %v815_v15 = vld [vmem:[%s1162_s6 + $0x10] sm:$0xff]   ;;  %s616_s15 = sshll.u32 %s887_s14, 4  ;;  %s617_s15 = int_to_ptr.vmem [resolvable:$true] %s616_s15 }
  0x17   :  { %731 = vmatprep.subr.bf16.mxu1 %v885_v3  ;;  %746 = vmatpush3.bf16.msra.mxu0 %v813_v13  ;;  %v816_v16 = vld [vmem:[%s1162_s6 + $0x18] sm:$0xff]   ;;  %v811_v22 = vld [vmem:[%s1159_s3] sm:$0xff]   ;;  %v812_v27 = vld [vmem:[%s1159_s3 + $0x8] sm:$0xff]   ;;  %p842_p1 = scmp.lt.s32.totalorder %s617_s15, %s617_s15 }
  0x18   :  { %747 = vmatprep.subr.bf16.mxu0 %v885_v3  ;;  %v817_v29 = vld [vmem:[%s1162_s6 + $0x20] sm:$0xff]   ;;  %v818_v30 = vld [vmem:[%s1162_s6 + $0x28] sm:$0xff]   ;;  %v819_v31 = vld [vmem:[%s1162_s6 + $0x30] sm:$0xff]  }
  0x19   :  { %v820_v32 = vld [vmem:[%s1162_s6 + $0x38] sm:$0xff]   ;;  %v821_v33 = vld [vmem:[%s1164_s8] sm:$0xff]   ;;  %v823_v34 = vld [vmem:[%s1164_s8 + $0x8] sm:$0xff]  }
  0x1a   :  { %732 = vmatpush3.bf16.msra.mxu1 %v810_v12  ;;  %v825_v35 = vld [vmem:[%s1164_s8 + $0x10] sm:$0xff]   ;;  %v827_v36 = vld [vmem:[%s1164_s8 + $0x18] sm:$0xff]   ;;  %v829_v37 = vld [vmem:[%s1164_s8 + $0x20] sm:$0xff]  }
  0x1b   :  { %737 = vmatprep.subr.bf16.mxu1 %v885_v3  ;;  %748 = vmatpush3.bf16.msra.mxu0 %v814_v14  ;;  %v831_v38 = vld [vmem:[%s1164_s8 + $0x28] sm:$0xff]   ;;  %v646_v44 = vld [vmem:[%s1161_s5] ss:$0 sm:$0xff]  ;;  %v826_v54 = vld [vmem:[%s1165_s9 + $0x10] sm:$0xff]  }
  0x1c   :  { %749 = vmatprep.subr.bf16.mxu0 %v885_v3  ;;  %v822_v51 = vld [vmem:[%s1165_s9] sm:$0xff]   ;;  %v824_v53 = vld [vmem:[%s1165_s9 + $0x8] sm:$0xff]   ;;  %v828_v55 = vld [vmem:[%s1165_s9 + $0x18] sm:$0xff]  }
  0x1d   :  { %v830_v56 = vld [vmem:[%s1165_s9 + $0x20] sm:$0xff]   ;;  %v832_v57 = vld [vmem:[%s1165_s9 + $0x28] sm:$0xff]   ;;  %v833_v58 = vld [vmem:[%s1164_s8 + $0x30] sm:$0xff]  }
  0x1e   :  { %v834_v59 = vld [vmem:[%s1165_s9 + $0x30] sm:$0xff]   ;;  %v835_v60 = vld [vmem:[%s1164_s8 + $0x38] sm:$0xff]   ;;  %v647_v62 = vld [vmem:[%s1163_s7] ss:$0 sm:$0xff]  ;;  %s888_s7 = smov [#allocation4]  }
  0x1f   :  { %750 = vmatpush3.bf16.msra.mxu0 %v815_v15  ;;  %v836_v61 = vld [vmem:[%s1165_s9 + $0x38] sm:$0xff]   ;;  %v656_v6 = vld [vmem:[%s1166_s10] ss:$0 sm:$0xff]  ;;  %s626_s16 = sshll.u32 %s888_s7, 4  ;;  %s837_s10 = scalar_lea.vmem %s617_s15, 128  ;;  %s1123_s16 = int_to_ptr.vmem [resolvable:$true] %s626_s16 }
  0x20   :  { %751 = vmatprep.subr.bf16.mxu0 %v885_v3  ;;  %v665_v7 = vld [vmem:[%s1167_s11] ss:$0 sm:$0xff]  ;;  %p838_p0 = scmp.ne.s32.totalorder %s617_s15, %s837_s10  ;;  %p843_p2 = scmp.lt.s32.totalorder %s837_s10, %s837_s10 }
  0x22   :  { %p844_p3 = por %p843_p2, %p842_p1 }
  0x23   :  { %752 = vmatpush3.bf16.msra.mxu0 %v816_v16 }
  0x24   :  { %753 = vmatprep.subr.bf16.mxu0 %v885_v3  ;;  %p845_p4 = pnand %p844_p3, %p838_p0 }
  0x27   :  { %754 = vmatpush3.bf16.msra.mxu0 %v817_v29 }
  0x28   :  { %755 = vmatprep.subr.bf16.mxu0 %v885_v3 }
  0x2b   :  { %756 = vmatpush3.bf16.msra.mxu0 %v818_v30 }
  0x2c   :  { %757 = vmatprep.subr.bf16.mxu0 %v885_v3 }
  0x2f   :  { %758 = vmatpush3.bf16.msra.mxu0 %v819_v31 }
  0x30   :  { %759 = vmatprep.subr.bf16.mxu0 %v885_v3 }
  0x33   :  { %760 = vmatpush3.bf16.msra.mxu0 %v820_v32 }
  0x34   :  { %785 = vmatprep.subr.bf16.mxu0 %v885_v3 }
  0xde   :  { %v93_v17 = vpop.f32.mrb[0].mxu1 }
  0xdf   :  { %v719_v18 = vpop.f32.mrb[1].mxu1  ;;  %v143_v28 = vpack.c.bf16 %v93_v17, %v93_v17 }
  0xe0   :  { %v96_v19 = vpop.f32.mrb[2].mxu1 }
  0xe1   :  { %v720_v20 = vpop.f32.mrb[3].mxu1 }
  0xe6   :  { %v137_v21 = vpop.f32.mrb[4].mxu1 }
  0xe7   :  { %v148_v23 = vpack.c.bf16 %v137_v21, %v137_v21  ;;  %v727_v24 = vpop.f32.mrb[5].mxu1 }
  0xe8   :  { %v140_v25 = vpop.f32.mrb[6].mxu1 }
  0xe9   :  { %v728_v26 = vpop.f32.mrb[7].mxu1  ;;  %734 = vmatmul.mubr.msk.bf16.vlgmr.msra.gmra.mrb[8].mxu1 %vm55_vm1, %v148_v23 }
  0xea   :  { %738 = vmatpush3.bf16.msra.mxu1 %v811_v22  ;;  %741 = vmatprep.mubr.msk.bf16.mxu1 %vm886_vm0, %v885_v3 }
  0xeb   :  { %739 = vmatprep.subr.bf16.mxu1 %v885_v3 }
  0xee   :  { %740 = vmatpush3.bf16.msra.mxu1 %v812_v27 }
  0xef   :  { %765 = vmatprep.subr.bf16.mxu1 %v885_v3 }
  0xf1   :  { %742 = vmatmul.mubr.msk.bf16.vlgmr.msra.gmra.mrb[12].mxu1 %vm55_vm1, %v143_v28 }
  0xf2   :  { %781 = vmatprep.mubr.msk.bf16.mxu1 %vm886_vm0, %v885_v3  ;;  %766 = vmatpush3.bf16.msra.mxu1 %v821_v33 }
  0xf3   :  { %767 = vmatprep.subr.bf16.mxu1 %v885_v3 }
  0xf6   :  { %768 = vmatpush3.bf16.msra.mxu1 %v823_v34 }
  0xf7   :  { %769 = vmatprep.subr.bf16.mxu1 %v885_v3 }
  0xfa   :  { %770 = vmatpush3.bf16.msra.mxu1 %v825_v35 }
  0xfb   :  { %771 = vmatprep.subr.bf16.mxu1 %v885_v3 }
  0xfe   :  { %772 = vmatpush3.bf16.msra.mxu1 %v827_v36 }
  0xff   :  { %773 = vmatprep.subr.bf16.mxu1 %v885_v3 }
 0x102   :  { %774 = vmatpush3.bf16.msra.mxu1 %v829_v37 }
 0x103   :  { %775 = vmatprep.subr.bf16.mxu1 %v885_v3 }
 0x106   :  { %776 = vmatpush3.bf16.msra.mxu1 %v831_v38 }
 0x107   :  { %777 = vmatprep.subr.bf16.mxu1 %v885_v3 }
 0x10a   :  { %778 = vmatpush3.bf16.msra.mxu1 %v833_v58 }
 0x10b   :  { %779 = vmatprep.subr.bf16.mxu1 %v885_v3 }
 0x10e   :  { %780 = vmatpush3.bf16.msra.mxu1 %v835_v60 }
 0x1bc   :  { %v202_v39 = vpop.f32.mrb[8].mxu1 }
 0x1bd   :  { %v735_v40 = vpop.f32.mrb[9].mxu1 }
 0x1be   :  { %v205_v41 = vpop.f32.mrb[10].mxu1 }
 0x1bf   :  { %v736_v42 = vpop.f32.mrb[11].mxu1 }
 0x1c4   :  { %v257_v43 = vpop.f32.mrb[12].mxu1 }
 0x1c5   :  { %v258_v45 = vadd.f32 %v257_v43, %v202_v39  ;;  %v743_v46 = vpop.f32.mrb[13].mxu1 }
 0x1c6   :  { %v260_v47 = vpop.f32.mrb[14].mxu1 }
 0x1c7   :  { %v270_v48 = vadd.f32 %v646_v44, %v258_v45  ;;  %v744_v49 = vpop.f32.mrb[15].mxu1 }
 0x1c9   :  { %v271_v50 = vmax.f32 %v270_v48, 0.0 }
 0x1cb   :  { %v272_v52 = vpack.c.bf16 %v271_v50, %v271_v50 }
 0x1cd   :  { %762 = vmatmul.mubr.bf16.vlgmr.msra.gmra.mrb[0].mxu0 %v272_v52 }
 0x1ce   :  { %786 = vmatpush3.bf16.msra.mxu0 %v822_v51  ;;  %801 = vmatprep.mubr.msk.bf16.mxu0 %vm886_vm0, %v885_v3 }
 0x1cf   :  { %787 = vmatprep.subr.bf16.mxu0 %v885_v3 }
 0x1d2   :  { %788 = vmatpush3.bf16.msra.mxu0 %v824_v53 }
 0x1d3   :  { %789 = vmatprep.subr.bf16.mxu0 %v885_v3 }
 0x1d6   :  { %790 = vmatpush3.bf16.msra.mxu0 %v826_v54 }
 0x1d7   :  { %791 = vmatprep.subr.bf16.mxu0 %v885_v3 }
 0x1da   :  { %792 = vmatpush3.bf16.msra.mxu0 %v828_v55 }
 0x1db   :  { %793 = vmatprep.subr.bf16.mxu0 %v885_v3 }
 0x1de   :  { %794 = vmatpush3.bf16.msra.mxu0 %v830_v56 }
 0x1df   :  { %795 = vmatprep.subr.bf16.mxu0 %v885_v3 }
 0x1e2   :  { %796 = vmatpush3.bf16.msra.mxu0 %v832_v57 }
 0x1e3   :  { %797 = vmatprep.subr.bf16.mxu0 %v885_v3 }
 0x1e6   :  { %798 = vmatpush3.bf16.msra.mxu0 %v834_v59 }
 0x1e7   :  { %799 = vmatprep.subr.bf16.mxu0 %v885_v3 }
 0x1ea   :  { %800 = vmatpush3.bf16.msra.mxu0 %v836_v61 }
 0x2a0   :  { %v378_v63 = vpop.f32.mrb[0].mxu0 }
 0x2a1   :  { %v379_v0 = vadd.f32 %v647_v62, %v378_v63  ;;  %v763_v1 = vpop.f32.mrb[1].mxu0 }
 0x2a2   :  { %v381_v2 = vpop.f32.mrb[2].mxu0 }
 0x2a3   :  { %v384_v4 = vmax.f32 %v379_v0, 0.0  ;;  %v764_v3 = vpop.f32.mrb[3].mxu0 }
 0x2a5   :  { %v385_v5 = vpack.c.bf16 %v384_v4, %v384_v4 }
 0x2a7   :  { %782 = vmatmul.mubr.bf16.vlgmr.msra.gmra.mrb[16].mxu1 %v385_v5  ;;  %802 = vmatmul.mubr.bf16.vlgmr.msra.gmra.mrb[4].mxu0 %v385_v5 }
 0x37a   :  { %v491_v8 = vpop.f32.mrb[16].mxu1  ;;  %v602_v9 = vpop.f32.mrb[4].mxu0 }
 0x37b   :  { %v492_v10 = vadd.f32 %v656_v6, %v491_v8  ;;  %v603_v11 = vadd.f32 %v665_v7, %v602_v9  ;;  %v783_v12 = vpop.f32.mrb[17].mxu1  ;;  %v803_v13 = vpop.f32.mrb[5].mxu0 }
 0x37c   :  { %v494_v14 = vpop.f32.mrb[18].mxu1  ;;  %v605_v15 = vpop.f32.mrb[6].mxu0 }
 0x37d   :  { %608 = vst.msk [vmem:[#allocation2] sm:$0xff] %vm55_vm1, %v492_v10  ;;  %609 = vst.msk [vmem:[#allocation4] sm:$0xff] %vm55_vm1, %v603_v11  ;;  %v784_v16 = vpop.f32.mrb[19].mxu1  ;;  %v804_v17 = vpop.f32.mrb[7].mxu0 }
 0x37e   :  { %848 = shalt.err (!%p845_p4)
}
 0x37f   :  { %s849_s5 = scalar_lea.hbm %s1168_s12, 128 }
 0x380   :  { %p850_p5 = scmp.ne.s32.totalorder %s1168_s12, %s849_s5  ;;  %p853_p6 = scmp.lt.u32.totalorder %s849_s5, %s1168_s12 }
 0x382   :  { %p855_p7 = pnand %p853_p6, %p850_p5 }
 0x384   :  { %858 = shalt.err (!%p855_p7)
}
 0x385   :  { %619 = dma.vmem_to_hbm [thread:$0]  %s617_s15, 128, %s1168_s12, [#allocation3]  }
 0x386   :  { %s859_s20 = scalar_lea.vmem %s1123_s16, 128  ;;  %p864_p9 = scmp.lt.s32.totalorder %s1123_s16, %s1123_s16 }
 0x387   :  { %p860_p8 = scmp.ne.s32.totalorder %s1123_s16, %s859_s20  ;;  %p865_p10 = scmp.lt.s32.totalorder %s859_s20, %s859_s20 }
 0x389   :  { %p866_p11 = por %p865_p10, %p864_p9 }
 0x38b   :  { %p867_p12 = pnand %p866_p11, %p860_p8 }
 0x38d   :  { %870 = shalt.err (!%p867_p12)
}
 0x38e   :  { %s871_s23 = scalar_lea.hbm %s1169_s13, 128 }
 0x38f   :  { %p872_p13 = scmp.ne.s32.totalorder %s1169_s13, %s871_s23  ;;  %p875_p0 = scmp.lt.u32.totalorder %s871_s23, %s1169_s13 }
 0x391   :  { %p877_p1 = pnand %p875_p0, %p872_p13 }
 0x393   :  { %880 = shalt.err (!%p877_p1)
}
 0x394   :  { %629 = dma.vmem_to_hbm [thread:$0]  %s1123_s16, 128, %s1169_s13, [#allocation5]  }
 0x395   :  { %881 = dma.done.wait [#allocation3], 128  }
 0x396   :  { %882 = vsyncadd [#allocation3], 4294967168 }
 0x397   :  { %883 = dma.done.wait [#allocation5], 128  }
 0x398   :  { %884 = vsyncadd [#allocation5], 4294967168 }
 0x399   :  { %636 = vsyncpa [#allocation3], 1 }
 0x39a   :  { %637 = vsyncpa [#allocation5], 1 }

</bundles_post_ra>
